<compile_context>
chip_gen: v5e
topology: v5e:2x2
jax: 0.10.0
libtpu: 0.0.40
codegen_flags: <defaults>
</compile_context>

<pallas_src>
import functools

import jax
import jax.numpy as jnp
from jax.experimental import pallas as pl
from jax.experimental.pallas import tpu as pltpu


# --------------------------------------------------------------------------- #
# Kernels
# --------------------------------------------------------------------------- #
def _gen_kernel_scratch(x_ref, w_ref, b_ref, o_ref, m_sc, l_sc, logits_sc):
    """Logits held in VMEM scratch: weight streamed once, matmul done once."""
    phase = pl.program_id(1)
    k = pl.program_id(2)

    @pl.when(jnp.logical_and(phase == 0, k == 0))
    def _init():
        m_sc[...] = jnp.full_like(m_sc, -jnp.inf)
        l_sc[...] = jnp.zeros_like(l_sc)

    @pl.when(phase == 0)
    def _stats():
        # MXU matmul in stored dtype (bf16/f32) with f32 accumulation.
        logits = jnp.dot(x_ref[...], w_ref[...],
                         preferred_element_type=jnp.float32) + b_ref[...]
        logits_sc[k] = logits
        m_prev = m_sc[...]
        m_new = jnp.maximum(m_prev, jnp.max(logits, axis=-1, keepdims=True))
        l_sc[...] = (l_sc[...] * jnp.exp(m_prev - m_new)
                     + jnp.sum(jnp.exp(logits - m_new), axis=-1, keepdims=True))
        m_sc[...] = m_new

    @pl.when(jnp.logical_and(phase == 1, k == 0))
    def _fold_lse():
        # Hoist lse = m + log(l) out of the per-k phase-1 body.
        m_sc[...] = m_sc[...] + jnp.log(l_sc[...])

    @pl.when(phase == 1)
    def _write():
        o_ref[...] = (logits_sc[k] - m_sc[...]).astype(o_ref.dtype)


def _gen_kernel_recompute(x_ref, w_ref, b_ref, o_ref, m_sc, l_sc):
    """Fallback for very large vocab: recompute logits in phase 1."""
    phase = pl.program_id(1)
    k = pl.program_id(2)

    logits = jnp.dot(x_ref[...], w_ref[...],
                     preferred_element_type=jnp.float32) + b_ref[...]

    @pl.when(jnp.logical_and(phase == 0, k == 0))
    def _init():
        m_sc[...] = jnp.full_like(m_sc, -jnp.inf)
        l_sc[...] = jnp.zeros_like(l_sc)

    @pl.when(phase == 0)
    def _stats():
        m_prev = m_sc[...]
        m_new = jnp.maximum(m_prev, jnp.max(logits, axis=-1, keepdims=True))
        l_sc[...] = (l_sc[...] * jnp.exp(m_prev - m_new)
                     + jnp.sum(jnp.exp(logits - m_new), axis=-1, keepdims=True))
        m_sc[...] = m_new

    @pl.when(jnp.logical_and(phase == 1, k == 0))
    def _fold_lse():
        m_sc[...] = m_sc[...] + jnp.log(l_sc[...])

    @pl.when(phase == 1)
    def _write():
        o_ref[...] = (logits - m_sc[...]).astype(o_ref.dtype)


# --------------------------------------------------------------------------- #
# Config selection (generation-tuned tiles + VMEM budget)
# --------------------------------------------------------------------------- #
def _round_down_128(v):
    return max(128, (v // 128) * 128)


def _pick_config(rows, d_model, vocab, in_bytes, out_bytes,
                 tm, tn, use_logits_scratch):
    try:
        kind = jax.devices()[0].device_kind.lower()
    except Exception:  # pragma: no cover
        kind = ""
    is_v5 = "v5" in kind
    is_v7 = ("v7" in kind) or ("7x" in kind)

    # Row tile: crossover MXU/HBM ~ 650 (v6e), ~240 (v5e), ~310 (v7x).
    if tm is None:
        tm = 256 if (is_v5 or is_v7) else 512
    tm = _round_down_128(min(tm, pl.cdiv(rows, 128) * 128))
    if is_v7:
        # 2 TCs share the "parallel" rows axis: prefer >= 2 row tiles.
        while pl.cdiv(rows, tm) < 2 and tm > 128:
            tm = _round_down_128(tm // 2)

    if tn is None:
        tn = 1024 if vocab >= 8192 else 512
    tn = _round_down_128(min(tn, pl.cdiv(vocab, 128) * 128))

    vmem_cap = (48 << 20) if is_v7 else (100 << 20)

    def usage(tm_, tn_, with_scratch):
        vocab_p = pl.cdiv(vocab, tn_) * tn_
        u = (2 * tm_ * d_model * in_bytes      # x double buffer
             + 2 * d_model * tn_ * in_bytes    # weight double buffer
             + 2 * tn_ * 4                     # bias double buffer
             + 2 * tm_ * tn_ * out_bytes       # output double buffer
             + 2 * tm_ * 4 * 2)                # m/l stats
        if with_scratch:
            u += tm_ * vocab_p * 4             # resident f32 logits
        return u

    # Shrink tn, then tm, if even the recompute working set overflows the budget
    # (large d_model / large tiles on v7x).
    while usage(tm, tn, False) > int(0.75 * vmem_cap) and tn > 128:
        tn = _round_down_128(tn // 2)
    while usage(tm, tn, False) > int(0.75 * vmem_cap) and tm > 128:
        tm = _round_down_128(tm // 2)

    if use_logits_scratch is None:
        use_scratch = usage(tm, tn, True) <= int(0.75 * vmem_cap)
    else:
        use_scratch = bool(use_logits_scratch)

    vmem_limit = int(min(vmem_cap, max(2 * usage(tm, tn, use_scratch), 32 << 20)))
    return dict(tm=int(tm), tn=int(tn), use_scratch=use_scratch,
                vmem_limit_bytes=vmem_limit)


# --------------------------------------------------------------------------- #
# pallas_call wrapper
# --------------------------------------------------------------------------- #
@functools.partial(
    jax.jit,
    static_argnames=("tm", "tn", "out_dtype", "use_scratch", "vmem_limit_bytes"))
def _generator_impl(x, w, b, *, tm, tn, out_dtype, use_scratch, vmem_limit_bytes):
    out_dtype = jnp.dtype(out_dtype)
    batch, seq, d_model = x.shape
    _, vocab = w.shape
    rows = batch * seq

    rows_p = pl.cdiv(rows, tm) * tm
    vocab_p = pl.cdiv(vocab, tn) * tn
    n_k = vocab_p // tn

    x2d = x.reshape(rows, d_model)
    if rows_p != rows:
        x2d = jnp.pad(x2d, ((0, rows_p - rows), (0, 0)))

    wp = w
    bp = b.astype(jnp.float32)
    if vocab_p != vocab:
        wp = jnp.pad(w, ((0, 0), (0, vocab_p - vocab)))
        # Large negative bias on padded vocab columns -> exp underflows to 0.
        bp = jnp.pad(bp, ((0, vocab_p - vocab),), constant_values=-1e9)
    b2d = bp.reshape(1, vocab_p)

    grid = (rows_p // tm, 2, n_k)  # (row tiles, phase, vocab tiles)

    if use_scratch:
        kernel = _gen_kernel_scratch
        # Phase 0 walks the vocab tiles; phase 1 parks on the last tile so the
        # weight/bias are streamed from HBM exactly once per row tile.
        w_map = lambda i, p, k: (0, k + p * (n_k - 1 - k))
        scratch = [
            pltpu.VMEM((tm, 1), jnp.float32),        # running max
            pltpu.VMEM((tm, 1), jnp.float32),        # running exp-sum
            pltpu.VMEM((n_k, tm, tn), jnp.float32),  # resident logits
        ]
    else:
        kernel = _gen_kernel_recompute
        w_map = lambda i, p, k: (0, k)
        scratch = [
            pltpu.VMEM((tm, 1), jnp.float32),
            pltpu.VMEM((tm, 1), jnp.float32),
        ]

    out = pl.pallas_call(
        kernel,
        out_shape=jax.ShapeDtypeStruct((rows_p, vocab_p), out_dtype),
        grid_spec=pltpu.PrefetchScalarGridSpec(
            num_scalar_prefetch=0,
            grid=grid,
            in_specs=[
                # x tile stays resident across phase & vocab steps.
                pl.BlockSpec((tm, d_model), lambda i, p, k: (i, 0)),
                pl.BlockSpec((d_model, tn), w_map),
                pl.BlockSpec((1, tn), w_map),
            ],
            # Phase 0: park on (i, 0), never write -> no garbage writeback.
            # Phase 1: walk (i, k) and fully overwrite each tile.
            out_specs=pl.BlockSpec((tm, tn), lambda i, p, k: (i, p * k)),
            scratch_shapes=scratch,
        ),
        compiler_params=pltpu.CompilerParams(
            dimension_semantics=("parallel", "arbitrary", "arbitrary"),
            vmem_limit_bytes=vmem_limit_bytes,
        ),
    )(x2d, wp, b2d)

    return out[:rows, :vocab].reshape(batch, seq, vocab)


def generator_forward(x, w, b, *, tm=None, tn=None, out_dtype=None,
                      use_logits_scratch=None):
    """Generator forward: log_softmax(x @ w + b, axis=-1).

    x: (batch, seq, d_model); w: (d_model, vocab) (transpose of nn.Linear
    weight); b: (vocab,). Returns (batch, seq, vocab) in `out_dtype`
    (defaults to x.dtype)."""
    batch, seq, d_model = x.shape
    d_model_w, vocab = w.shape
    assert d_model_w == d_model
    if out_dtype is None:
        out_dtype = x.dtype
    cfg = _pick_config(
        rows=batch * seq, d_model=d_model, vocab=vocab,
        in_bytes=jnp.dtype(x.dtype).itemsize,
        out_bytes=jnp.dtype(out_dtype).itemsize,
        tm=tm, tn=tn, use_logits_scratch=use_logits_scratch)
    return _generator_impl(x, w, b, out_dtype=jnp.dtype(out_dtype).name, **cfg)


def _reference(x, w, b):
    logits = jnp.einsum("bsd,dv->bsv", x, w,
                        preferred_element_type=jnp.float32) + b.astype(jnp.float32)
    return jax.nn.log_softmax(logits, axis=-1)


if __name__ == "__main__":
    key = jax.random.PRNGKey(0)

    # --- Check 1: small shapes, bf16 operands to the MXU -------------------
    batch, seq, d_model, vocab = 2, 8, 32, 128
    kx, kw, kb = jax.random.split(key, 3)
    x = jax.random.normal(kx, (batch, seq, d_model), dtype=jnp.float32).astype(jnp.bfloat16)
    # nn.Linear(d_model, vocab): weight (vocab, d_model), bias (vocab,); weight is
    # stored pre-transposed as (d_model, vocab) for the kernel.
    w = (jax.random.normal(kw, (d_model, vocab), dtype=jnp.float32)
         * (1.0 / jnp.sqrt(d_model))).astype(jnp.bfloat16)
    b = jax.random.normal(kb, (vocab,), dtype=jnp.float32) * 0.01

    out = jax.block_until_ready(generator_forward(x, w, b))
    ref = _reference(x, w, b)
    assert out.shape == (batch, seq, vocab)
    assert jnp.allclose(out.astype(jnp.float32), ref, atol=2e-2, rtol=2e-2), \
        "mismatch vs reference (check 1)"

    # --- Check 2: non-divisible rows & vocab, multiple vocab tiles ----------
    batch2, seq2, d_model2, vocab2 = 2, 5, 32, 200
    kx2, kw2, kb2 = jax.random.split(jax.random.PRNGKey(1), 3)
    x2 = jax.random.normal(kx2, (batch2, seq2, d_model2), dtype=jnp.float32).astype(jnp.bfloat16)
    w2 = (jax.random.normal(kw2, (d_model2, vocab2), dtype=jnp.float32)
          * (1.0 / jnp.sqrt(d_model2))).astype(jnp.bfloat16)
    b2 = jax.random.normal(kb2, (vocab2,), dtype=jnp.float32) * 0.01
    ref2 = _reference(x2, w2, b2)

    out2 = jax.block_until_ready(generator_forward(x2, w2, b2, tn=128))
    assert out2.shape == (batch2, seq2, vocab2)
    assert jnp.allclose(out2.astype(jnp.float32), ref2, atol=2e-2, rtol=2e-2), \
        "mismatch vs reference (check 2, logits-scratch variant)"

    # --- Check 3: exercise the large-vocab recompute fallback explicitly ----
    out3 = jax.block_until_ready(
        generator_forward(x2, w2, b2, tn=128, use_logits_scratch=False))
    assert jnp.allclose(out3.astype(jnp.float32), ref2, atol=2e-2, rtol=2e-2), \
        "mismatch vs reference (check 3, recompute variant)"

    # TODO(synk): optionally fuse the downstream NLL/cross-entropy gather (scalar-
    # prefetched target ids) so the full (rows, vocab) log-prob tensor is never
    # written back to HBM.
    print("KERNEL_OK")
</pallas_src>

<mosaic_0001>
module attributes {stable_mosaic.version = 11 : i64} {
  func.func @_gen_kernel_scratch(%arg0: i32, %arg1: i32, %arg2: i32, %arg3: memref<128x32xbf16, #tpu.memory_space<vmem>>, %arg4: memref<32x128xbf16, #tpu.memory_space<vmem>>, %arg5: memref<1x128xf32, #tpu.memory_space<vmem>>, %arg6: memref<128x128xbf16, #tpu.memory_space<vmem>>, %arg7: memref<128x1xf32, #tpu.memory_space<vmem>>, %arg8: memref<128x1xf32, #tpu.memory_space<vmem>>, %arg9: memref<1x128x128xf32, #tpu.memory_space<vmem>>) attributes {dimension_semantics = [#tpu.dimension_semantics<parallel>, #tpu.dimension_semantics<arbitrary>, #tpu.dimension_semantics<arbitrary>], iteration_bounds = array<i64: 1, 2, 1>, scalar_prefetch = 0 : i64, scratch_operands = 3 : i64, tpu.core_type = #tpu.core_type<tc>, window_params = [{transform_indices = @transform_0, window_bounds = array<i64: 128, 32>}, {transform_indices = @transform_1, window_bounds = array<i64: 32, 128>}, {transform_indices = @transform_2, window_bounds = array<i64: 1, 128>}, {transform_indices = @transform_3, window_bounds = array<i64: 128, 128>}]} {
    %c0_i32 = arith.constant 0 : i32
    %0 = arith.cmpi eq, %arg1, %c0_i32 : i32
    %c0_i32_0 = arith.constant 0 : i32
    %1 = arith.cmpi eq, %arg2, %c0_i32_0 : i32
    %2 = arith.andi %0, %1 : i1
    %3 = arith.extui %2 : i1 to i32
    %c0_i32_1 = arith.constant 0 : i32
    %4 = arith.cmpi ne, %3, %c0_i32_1 : i32
    scf.if %4 {
      %cst = arith.constant 0xFF800000 : f32
      %16 = vector.broadcast %cst : f32 to vector<128x1xf32>
      %c0 = arith.constant 0 : index
      %c0_8 = arith.constant 0 : index
      %17 = vector.load %arg7[%c0, %c0_8] : memref<128x1xf32, #tpu.memory_space<vmem>>, vector<128x1xf32>
      tpu.vector_store %arg7[%c0, %c0_8], %16 {strides = array<i32>} : memref<128x1xf32, #tpu.memory_space<vmem>>, vector<128x1xf32>,
      %cst_9 = arith.constant 0.000000e+00 : f32
      %18 = vector.broadcast %cst_9 : f32 to vector<128x1xf32>
      %c0_10 = arith.constant 0 : index
      %c0_11 = arith.constant 0 : index
      %19 = vector.load %arg8[%c0_10, %c0_11] : memref<128x1xf32, #tpu.memory_space<vmem>>, vector<128x1xf32>
      tpu.vector_store %arg8[%c0_10, %c0_11], %18 {strides = array<i32>} : memref<128x1xf32, #tpu.memory_space<vmem>>, vector<128x1xf32>,
    } else {
    }
    %c0_i32_2 = arith.constant 0 : i32
    %5 = arith.cmpi eq, %arg1, %c0_i32_2 : i32
    %6 = arith.extui %5 : i1 to i32
    %c0_i32_3 = arith.constant 0 : i32
    %7 = arith.cmpi ne, %6, %c0_i32_3 : i32
    scf.if %7 {
      %c0 = arith.constant 0 : index
      %c0_8 = arith.constant 0 : index
      %16 = vector.load %arg3[%c0, %c0_8] : memref<128x32xbf16, #tpu.memory_space<vmem>>, vector<128x32xbf16>
      %c0_9 = arith.constant 0 : index
      %c0_10 = arith.constant 0 : index
      %17 = vector.load %arg4[%c0_9, %c0_10] : memref<32x128xbf16, #tpu.memory_space<vmem>>, vector<32x128xbf16>
      %cst = arith.constant dense<0.000000e+00> : vector<128x128xf32>
      %18 = tpu.matmul %16, %17, %cst {dimension_numbers = #tpu.dot_dimension_numbers<[1], [0], [0], [1], [0, 0, 1, 1], [], []>} : vector<128x32xbf16>, vector<32x128xbf16>, vector<128x128xf32> -> vector<128x128xf32>
      %c0_11 = arith.constant 0 : index
      %c0_12 = arith.constant 0 : index
      %19 = vector.load %arg5[%c0_11, %c0_12] : memref<1x128xf32, #tpu.memory_space<vmem>>, vector<1x128xf32>
      %20 = vector.broadcast %19 : vector<1x128xf32> to vector<128x128xf32>
      %21 = arith.addf %18, %20 : vector<128x128xf32>
      %22 = arith.index_cast %arg2 : i32 to index
      %c0_13 = arith.constant 0 : index
      %c0_14 = arith.constant 0 : index
      %23 = vector.load %arg9[%22, %c0_13, %c0_14] : memref<1x128x128xf32, #tpu.memory_space<vmem>>, vector<1x128x128xf32>
      %24 = vector.shape_cast %23 : vector<1x128x128xf32> to vector<128x128xf32>
      %25 = vector.shape_cast %21 : vector<128x128xf32> to vector<1x128x128xf32>
      tpu.vector_store %arg9[%22, %c0_13, %c0_14], %25 {strides = array<i32>} : memref<1x128x128xf32, #tpu.memory_space<vmem>>, vector<1x128x128xf32>,
      %c0_15 = arith.constant 0 : index
      %c0_16 = arith.constant 0 : index
      %26 = vector.load %arg7[%c0_15, %c0_16] : memref<128x1xf32, #tpu.memory_space<vmem>>, vector<128x1xf32>
      %cst_17 = arith.constant dense<0xFF800000> : vector<128xf32>
      %27 = vector.multi_reduction <maximumf>, %21, %cst_17 [1] : vector<128x128xf32> to vector<128xf32>
      %28 = vector.shape_cast %27 : vector<128xf32> to vector<128x1xf32>
      %29 = arith.maximumf %26, %28 : vector<128x1xf32>
      %c0_18 = arith.constant 0 : index
      %c0_19 = arith.constant 0 : index
      %30 = vector.load %arg8[%c0_18, %c0_19] : memref<128x1xf32, #tpu.memory_space<vmem>>, vector<128x1xf32>
      %31 = arith.subf %26, %29 : vector<128x1xf32>
      %32 = math.exp %31 : vector<128x1xf32>
      %33 = arith.mulf %30, %32 : vector<128x1xf32>
      %34 = vector.broadcast %29 : vector<128x1xf32> to vector<128x128xf32>
      %35 = arith.subf %21, %34 : vector<128x128xf32>
      %36 = math.exp %35 : vector<128x128xf32>
      %cst_20 = arith.constant dense<0.000000e+00> : vector<128xf32>
      %37 = vector.multi_reduction <add>, %36, %cst_20 [1] : vector<128x128xf32> to vector<128xf32>
      %38 = vector.shape_cast %37 : vector<128xf32> to vector<128x1xf32>
      %39 = arith.addf %33, %38 : vector<128x1xf32>
      %c0_21 = arith.constant 0 : index
      %c0_22 = arith.constant 0 : index
      %40 = vector.load %arg8[%c0_21, %c0_22] : memref<128x1xf32, #tpu.memory_space<vmem>>, vector<128x1xf32>
      tpu.vector_store %arg8[%c0_21, %c0_22], %39 {strides = array<i32>} : memref<128x1xf32, #tpu.memory_space<vmem>>, vector<128x1xf32>,
      %c0_23 = arith.constant 0 : index
      %c0_24 = arith.constant 0 : index
      %41 = vector.load %arg7[%c0_23, %c0_24] : memref<128x1xf32, #tpu.memory_space<vmem>>, vector<128x1xf32>
      tpu.vector_store %arg7[%c0_23, %c0_24], %29 {strides = array<i32>} : memref<128x1xf32, #tpu.memory_space<vmem>>, vector<128x1xf32>,
    } else {
    }
    %c1_i32 = arith.constant 1 : i32
    %8 = arith.cmpi eq, %arg1, %c1_i32 : i32
    %c0_i32_4 = arith.constant 0 : i32
    %9 = arith.cmpi eq, %arg2, %c0_i32_4 : i32
    %10 = arith.andi %8, %9 : i1
    %11 = arith.extui %10 : i1 to i32
    %c0_i32_5 = arith.constant 0 : i32
    %12 = arith.cmpi ne, %11, %c0_i32_5 : i32
    scf.if %12 {
      %c0 = arith.constant 0 : index
      %c0_8 = arith.constant 0 : index
      %16 = vector.load %arg7[%c0, %c0_8] : memref<128x1xf32, #tpu.memory_space<vmem>>, vector<128x1xf32>
      %c0_9 = arith.constant 0 : index
      %c0_10 = arith.constant 0 : index
      %17 = vector.load %arg8[%c0_9, %c0_10] : memref<128x1xf32, #tpu.memory_space<vmem>>, vector<128x1xf32>
      %18 = math.log %17 : vector<128x1xf32>
      %19 = arith.addf %16, %18 : vector<128x1xf32>
      %c0_11 = arith.constant 0 : index
      %c0_12 = arith.constant 0 : index
      %20 = vector.load %arg7[%c0_11, %c0_12] : memref<128x1xf32, #tpu.memory_space<vmem>>, vector<128x1xf32>
      tpu.vector_store %arg7[%c0_11, %c0_12], %19 {strides = array<i32>} : memref<128x1xf32, #tpu.memory_space<vmem>>, vector<128x1xf32>,
    } else {
    }
    %c1_i32_6 = arith.constant 1 : i32
    %13 = arith.cmpi eq, %arg1, %c1_i32_6 : i32
    %14 = arith.extui %13 : i1 to i32
    %c0_i32_7 = arith.constant 0 : i32
    %15 = arith.cmpi ne, %14, %c0_i32_7 : i32
    scf.if %15 {
      %16 = arith.index_cast %arg2 : i32 to index
      %c0 = arith.constant 0 : index
      %c0_8 = arith.constant 0 : index
      %17 = vector.load %arg9[%16, %c0, %c0_8] : memref<1x128x128xf32, #tpu.memory_space<vmem>>, vector<1x128x128xf32>
      %18 = vector.shape_cast %17 : vector<1x128x128xf32> to vector<128x128xf32>
      %c0_9 = arith.constant 0 : index
      %c0_10 = arith.constant 0 : index
      %19 = vector.load %arg7[%c0_9, %c0_10] : memref<128x1xf32, #tpu.memory_space<vmem>>, vector<128x1xf32>
      %20 = vector.broadcast %19 : vector<128x1xf32> to vector<128x128xf32>
      %21 = arith.subf %18, %20 : vector<128x128xf32>
      %22 = arith.truncf %21 : vector<128x128xf32> to vector<128x128xbf16>
      %c0_11 = arith.constant 0 : index
      %c0_12 = arith.constant 0 : index
      %23 = vector.load %arg6[%c0_11, %c0_12] : memref<128x128xbf16, #tpu.memory_space<vmem>>, vector<128x128xbf16>
      tpu.vector_store %arg6[%c0_11, %c0_12], %22 {strides = array<i32>} : memref<128x128xbf16, #tpu.memory_space<vmem>>, vector<128x128xbf16>,
    } else {
    }
    return
  }
  func.func @transform_0(%arg0: i32, %arg1: i32, %arg2: i32) -> (i32, i32) {
    %c0_i32 = arith.constant 0 : i32
    %c0_i32_0 = arith.constant 0 : i32
    return %arg0, %c0_i32 : i32, i32
  }
  func.func @transform_1(%arg0: i32, %arg1: i32, %arg2: i32) -> (i32, i32) {
    %c0_i32 = arith.constant 0 : i32
    %0 = arith.subi %c0_i32, %arg2 : i32
    %1 = arith.muli %arg1, %0 : i32
    %2 = arith.addi %arg2, %1 : i32
    %c0_i32_0 = arith.constant 0 : i32
    %c0_i32_1 = arith.constant 0 : i32
    return %c0_i32_0, %2 : i32, i32
  }
  func.func @transform_2(%arg0: i32, %arg1: i32, %arg2: i32) -> (i32, i32) {
    %c0_i32 = arith.constant 0 : i32
    %0 = arith.subi %c0_i32, %arg2 : i32
    %1 = arith.muli %arg1, %0 : i32
    %2 = arith.addi %arg2, %1 : i32
    %c0_i32_0 = arith.constant 0 : i32
    %c0_i32_1 = arith.constant 0 : i32
    return %c0_i32_0, %2 : i32, i32
  }
  func.func @transform_3(%arg0: i32, %arg1: i32, %arg2: i32) -> (i32, i32) {
    %0 = arith.muli %arg1, %arg2 : i32
    %c0_i32 = arith.constant 0 : i32
    return %arg0, %0 : i32, i32
  }
}

</mosaic_0001>

<bundles_post_ra>
// kernel: _generator_impl.1
= control target key start
LH: loop header
LB: loop body
LE: loop exit
PB: predicated region body
PF: predicated region fallthrough
CT: control target
= control target key end

     0   :  { %s1527_s12 = smov 0   ;;  %s1529_s13 = smov 0   ;;  %s1977_s0 = inlined_call_operand.vmem [shape: bf16[128,32], index: 0, kind: input, shape index: {}]   ;;  %s1978_s1 = inlined_call_operand.vmem [shape: bf16[32,128], index: 1, kind: input, shape index: {}]   ;;  %s1979_s2 = inlined_call_operand.vmem [shape: f32[1,128], index: 2, kind: input, shape index: {}]   ;;  %s1980_s3 = inlined_call_operand.vmem [shape: bf16[128,128], index: 3, kind: output, shape index: {}]  }
   0x1   :  { %s1531_s14 = smov 0  }
   0x2 LB: > { %s28_s15 = sadd.s32 1, %s1497_s13  ;;  %p1226_p0 = scmp.ge.s32.totalorder %s1501_s14, 1  ;;  %s1501_s14 = sphi %s1531_s14, %s13_s14   ;;  %s1497_s13 = sphi %s1529_s13, %s1998_s13   ;;  %s1493_s12 = sphi %s1527_s12, %s1997_s12  }
   0x3   : > { %p30_p1 = scmp.ge.s32.totalorder %s28_s15, 2  ;;  %p202_p2 = scmp.lt.s32.totalorder %s1501_s14, 3 }
   0x5   : > { %s2000_s15 = smov (%p30_p1, %s28_s15), 0  ;;  %p203_p3 = pnand %p1226_p0, %p202_p2 }
   0x6   : > { %p280_p4 = scmp.eq.s32.totalorder (!%p203_p3), %s1493_s12, 0 }
   0x7   : > { %206 = sbr.rel (%p203_p3) target bundleno = 807 (0x327), region = 32 }
   0xc   : > { %285 = sbr.rel (!%p280_p4) target bundleno = 45 (0x2d), region = 36  ;;  %vm286_vm0 = vcmask (%p280_p4), 7168   ;;  %v1503_v0 = vmov (%p280_p4), -inf   ;;  %v1504_v1 = vmov (%p280_p4), 0.0  }
   0xd   : > { %287 = vst.msk [vmem:[#allocation2] sm:$0xff] (%p280_p4), %vm286_vm0, %v1503_v0 }
   0xe   : > { %288 = vst.msk [vmem:[#allocation2 + $0x8] sm:$0xff] (%p280_p4), %vm286_vm0, %v1503_v0 }
   0xf   : > { %289 = vst.msk [vmem:[#allocation2 + $0x10] sm:$0xff] (%p280_p4), %vm286_vm0, %v1503_v0 }
  0x10   : > { %290 = vst.msk [vmem:[#allocation2 + $0x18] sm:$0xff] (%p280_p4), %vm286_vm0, %v1503_v0 }
  0x11   : > { %291 = vst.msk [vmem:[#allocation2 + $0x20] sm:$0xff] %vm286_vm0, %v1503_v0 }
  0x12   : > { %292 = vst.msk [vmem:[#allocation2 + $0x28] sm:$0xff] %vm286_vm0, %v1503_v0 }
  0x13   : > { %293 = vst.msk [vmem:[#allocation2 + $0x30] sm:$0xff] %vm286_vm0, %v1503_v0 }
  0x14   : > { %294 = vst.msk [vmem:[#allocation2 + $0x38] sm:$0xff] %vm286_vm0, %v1503_v0 }
  0x15   : > { %295 = vst.msk [vmem:[#allocation2 + $0x40] sm:$0xff] %vm286_vm0, %v1503_v0 }
  0x16   : > { %296 = vst.msk [vmem:[#allocation2 + $0x48] sm:$0xff] %vm286_vm0, %v1503_v0 }
  0x17   : > { %297 = vst.msk [vmem:[#allocation2 + $0x50] sm:$0xff] %vm286_vm0, %v1503_v0 }
  0x18   : > { %298 = vst.msk [vmem:[#allocation2 + $0x58] sm:$0xff] %vm286_vm0, %v1503_v0 }
  0x19   : > { %299 = vst.msk [vmem:[#allocation2 + $0x60] sm:$0xff] %vm286_vm0, %v1503_v0 }
  0x1a   : > { %300 = vst.msk [vmem:[#allocation2 + $0x68] sm:$0xff] %vm286_vm0, %v1503_v0 }
  0x1b   : > { %301 = vst.msk [vmem:[#allocation2 + $0x70] sm:$0xff] %vm286_vm0, %v1503_v0 }
  0x1c   : > { %302 = vst.msk [vmem:[#allocation2 + $0x78] sm:$0xff] %vm286_vm0, %v1503_v0 }
  0x1d   : > { %303 = vst.msk [vmem:[#allocation3] sm:$0xff] %vm286_vm0, %v1504_v1 }
  0x1e   : > { %304 = vst.msk [vmem:[#allocation3 + $0x8] sm:$0xff] %vm286_vm0, %v1504_v1 }
  0x1f   : > { %305 = vst.msk [vmem:[#allocation3 + $0x10] sm:$0xff] %vm286_vm0, %v1504_v1 }
  0x20   : > { %306 = vst.msk [vmem:[#allocation3 + $0x18] sm:$0xff] %vm286_vm0, %v1504_v1 }
  0x21   : > { %307 = vst.msk [vmem:[#allocation3 + $0x20] sm:$0xff] %vm286_vm0, %v1504_v1 }
  0x22   : > { %308 = vst.msk [vmem:[#allocation3 + $0x28] sm:$0xff] %vm286_vm0, %v1504_v1 }
  0x23   : > { %309 = vst.msk [vmem:[#allocation3 + $0x30] sm:$0xff] %vm286_vm0, %v1504_v1 }
  0x24   : > { %310 = vst.msk [vmem:[#allocation3 + $0x38] sm:$0xff] %vm286_vm0, %v1504_v1 }
  0x25   : > { %311 = vst.msk [vmem:[#allocation3 + $0x40] sm:$0xff] %vm286_vm0, %v1504_v1 }
  0x26   : > { %312 = vst.msk [vmem:[#allocation3 + $0x48] sm:$0xff] %vm286_vm0, %v1504_v1 }
  0x27   : > { %313 = vst.msk [vmem:[#allocation3 + $0x50] sm:$0xff] %vm286_vm0, %v1504_v1 }
  0x28   : > { %314 = vst.msk [vmem:[#allocation3 + $0x58] sm:$0xff] %vm286_vm0, %v1504_v1 }
  0x29   : > { %315 = vst.msk [vmem:[#allocation3 + $0x60] sm:$0xff] %vm286_vm0, %v1504_v1 }
  0x2a   : > { %316 = vst.msk [vmem:[#allocation3 + $0x68] sm:$0xff] %vm286_vm0, %v1504_v1 }
  0x2b   : > { %317 = vst.msk [vmem:[#allocation3 + $0x70] sm:$0xff] %vm286_vm0, %v1504_v1 }
  0x2c   : > { %318 = vst.msk [vmem:[#allocation3 + $0x78] sm:$0xff] %vm286_vm0, %v1504_v1 }
  0x2d PF: > { %p1228_p5 = scmp.ne.s32.totalorder %s1493_s12, 0 }
  0x2f   : > { %321 = sbr.rel (%p1228_p5) target bundleno = 608 (0x260), region = 40 }
  0x34   : > { %v1293_v2 = vld [vmem:[%s1978_s1 + $0x8] sm:$0xff]  ;;  %v1292_v3 = vld [vmem:[%s1978_s1] sm:$0xff]  ;;  %v1286_v5 = vld [vmem:[%s1977_s0 + $0x10] sm:$0xff]  ;;  %vm398_vm1 = vcmask 261120   ;;  %v1505_v45 = vmov 0   ;;  %vm810_vm2 = vcmask 7168  }
  0x35   : > { %429 = vmatpush.bf16.msra.mxu0 %v1293_v2  ;;  %1342 = vmatpush.bf16.msra.mxu1 %v1293_v2  ;;  %v1284_v4 = vld [vmem:[%s1977_s0] sm:$0xff]  ;;  %v1290_v6 = vld [vmem:[%s1977_s0 + $0x30] sm:$0xff]  ;;  %v1285_v8 = vld [vmem:[%s1977_s0 + $0x8] sm:$0xff] }
  0x36   : > { %1344 = vmatpush.bf16.msra.mxu3 %v1293_v2  ;;  %1343 = vmatpush.bf16.msra.mxu2 %v1293_v2  ;;  %v1288_v7 = vld [vmem:[%s1977_s0 + $0x20] sm:$0xff]  ;;  %v1287_v9 = vld [vmem:[%s1977_s0 + $0x18] sm:$0xff]  ;;  %v1289_v10 = vld [vmem:[%s1977_s0 + $0x28] sm:$0xff] }
  0x37   : > { %v1291_v11 = vld [vmem:[%s1977_s0 + $0x38] sm:$0xff]  ;;  %v1379_v12 = vld [vmem:[%s1979_s2] ss:$0 sm:$0xff]  ;;  %1376 = vset.pattern.permute.xlu1 %v1505_v45  ;;  %1377 = vset.pattern.permute.xlu0 %v1505_v45  ;;  %v1725_v62 = vld [vmem:[#allocation2 + $0x68] sm:$0xff] }
  0x38   : > { %1378 = vset.pattern.permute.xlu2 %v1505_v45  ;;  %v1686_v46 = vld [vmem:[#allocation2 + $0x20] sm:$0xff]  ;;  %v1727_v63 = vld [vmem:[#allocation2 + $0x28] sm:$0xff] }
  0x39   : > { %430 = vmatpush.bf16.msra.mxu0 %v1292_v3  ;;  %1345 = vmatpush.bf16.msra.mxu1 %v1292_v3  ;;  %v1688_v47 = vld [vmem:[#allocation2] sm:$0xff]  ;;  %v1729_v0 = vld [vmem:[#allocation2 + $0x8] sm:$0xff] }
  0x3a   : > { %1347 = vmatpush.bf16.msra.mxu3 %v1292_v3  ;;  %1346 = vmatpush.bf16.msra.mxu2 %v1292_v3  ;;  %v1705_v54 = vld [vmem:[#allocation2 + $0x40] sm:$0xff] }
  0x3b   : > { %v1707_v55 = vld [vmem:[#allocation2 + $0x60] sm:$0xff] }
  0x3c   : > { %1269 = vmatmul.msk.bf16.vlgmr.msra.gmra.mxu0 %vm398_vm1, %v1284_v4  ;;  %1271 = vmatmul.msk.bf16.vlgmr.msra.gmra.mxu1 %vm398_vm1, %v1286_v5 }
  0x3d   : > { %1275 = vmatmul.msk.bf16.vlgmr.msra.gmra.mxu3 %vm398_vm1, %v1290_v6  ;;  %1273 = vmatmul.msk.bf16.vlgmr.msra.gmra.mxu2 %vm398_vm1, %v1288_v7 }
  0x4c   : > { %1270 = vmatmul.msk.bf16.gmra.mxu0 %vm398_vm1, %v1285_v8  ;;  %1272 = vmatmul.msk.bf16.gmra.mxu1 %vm398_vm1, %v1287_v9 }
  0x4d   : > { %1274 = vmatmul.msk.bf16.gmra.mxu2 %vm398_vm1, %v1289_v10  ;;  %1276 = vmatmul.msk.bf16.gmra.mxu3 %vm398_vm1, %v1291_v11  ;;  %v1754_v10 = vld [vmem:[#allocation2 + $0x10] sm:$0xff]  ;;  %v1756_v11 = vld [vmem:[#allocation2 + $0x48] sm:$0xff] }
  0xb9   : > { %v432_v13 = vpop.f32.mrf.mxu0  ;;  %v442_v14 = vpop.f32.mrf.mxu1 }
  0xba   : > { %v1622_v15 = vadd.f32 %v1379_v12, %v432_v13  ;;  %v1624_v16 = vadd.f32 %v1379_v12, %v442_v14 }
  0xbc   : > { %474 = vst [vmem:[#allocation4 + $0x30] sm:$0xff] %v1622_v15  ;;  %514 = vmax.xlane.f32.xlu2 %v1624_v16  ;;  %506 = vmax.xlane.f32.xlu0 %v1622_v15 }
  0xbd   : > { %478 = vst [vmem:[#allocation4 + $0x50] sm:$0xff] %v1624_v16 }
  0xc0   : > { %v462_v17 = vpop.f32.mrf.mxu3  ;;  %v452_v18 = vpop.f32.mrf.mxu2 }
  0xc1   : > { %v1630_v19 = vadd.f32 %v1379_v12, %v462_v17  ;;  %v434_v20 = vpop.f32.mrf.mxu0  ;;  %v1632_v21 = vadd.f32 %v1379_v12, %v452_v18  ;;  %v444_v22 = vpop.f32.mrf.mxu1 }
  0xc2   : > { %v1634_v23 = vadd.f32 %v1379_v12, %v434_v20  ;;  %v1636_v24 = vadd.f32 %v1379_v12, %v444_v22 }
  0xc3   : > { %486 = vst [vmem:[#allocation4 + $0x60] sm:$0xff] %v1630_v19 }
  0xc4   : > { %475 = vst [vmem:[#allocation4] sm:$0xff] %v1634_v23  ;;  %522 = vmax.xlane.f32.xlu2 %v1632_v21  ;;  %530 = vmax.xlane.f32.xlu0 %v1630_v19 }
  0xc5   : > { %482 = vst [vmem:[#allocation4 + $0x40] sm:$0xff] %v1632_v21 }
  0xc6   : > { %479 = vst [vmem:[#allocation4 + $0x68] sm:$0xff] %v1636_v24 }
  0xc8   : > { %v464_v25 = vpop.f32.mrf.mxu3  ;;  %v454_v26 = vpop.f32.mrf.mxu2 }
  0xc9   : > { %v1644_v27 = vadd.f32 %v1379_v12, %v464_v25  ;;  %v1646_v28 = vadd.f32 %v1379_v12, %v454_v26  ;;  %v437_v29 = vpop.f32.mrf.mxu0  ;;  %v447_v30 = vpop.f32.mrf.mxu1 }
  0xca   : > { %v1648_v31 = vadd.f32 %v1379_v12, %v447_v30  ;;  %v1652_v32 = vadd.f32 %v1379_v12, %v437_v29  ;;  %v1783_v30 = vld [vmem:[#allocation2 + $0x50] sm:$0xff] }
  0xcb   : > { %487 = vst [vmem:[#allocation4 + $0x70] sm:$0xff] %v1644_v27  ;;  %532 = vmax.xlane.f32.xlu1 %v1644_v27 }
  0xcc   : > { %483 = vst [vmem:[#allocation4 + $0x20] sm:$0xff] %v1646_v28  ;;  %516 = vmax.xlane.f32.xlu2 %v1636_v24  ;;  %508 = vmax.xlane.f32.xlu0 %v1634_v23 }
  0xcd   : > { %476 = vst [vmem:[#allocation4 + $0x58] sm:$0xff] %v1652_v32 }
  0xce   : > { %480 = vst [vmem:[#allocation4 + $0x8] sm:$0xff] %v1648_v31 }
  0xd0   : > { %v457_v33 = vpop.f32.mrf.mxu2  ;;  %v467_v34 = vpop.f32.mrf.mxu3 }
  0xd1   : > { %v1659_v35 = vadd.f32 %v1379_v12, %v457_v33  ;;  %v449_v36 = vpop.f32.mrf.mxu1  ;;  %v1661_v37 = vadd.f32 %v1379_v12, %v467_v34  ;;  %v439_v38 = vpop.f32.mrf.mxu0  ;;  %v1785_v33 = vld [vmem:[#allocation2 + $0x30] sm:$0xff]  ;;  %v1787_v34 = vld [vmem:[#allocation2 + $0x58] sm:$0xff] }
  0xd2   : > { %v1663_v39 = vadd.f32 %v1379_v12, %v449_v36  ;;  %v1670_v40 = vadd.f32 %v1379_v12, %v439_v38 }
  0xd3   : > { %510 = vmax.xlane.f32.xlu1 %v1652_v32  ;;  %484 = vst [vmem:[#allocation4 + $0x10] sm:$0xff] %v1659_v35 }
  0xd4   : > { %524 = vmax.xlane.f32.xlu0 %v1646_v28  ;;  %481 = vst [vmem:[#allocation4 + $0x48] sm:$0xff] %v1663_v39  ;;  %534 = vmax.xlane.f32.xlu2 %v1661_v37 }
  0xd5   : > { %488 = vst [vmem:[#allocation4 + $0x78] sm:$0xff] %v1661_v37 }
  0xd6   : > { %477 = vst [vmem:[#allocation4 + $0x18] sm:$0xff] %v1670_v40 }
  0xd8   : > { %v459_v41 = vpop.f32.mrf.mxu2  ;;  %v469_v42 = vpop.f32.mrf.mxu3 }
  0xd9   : > { %v1674_v43 = vadd.f32 %v1379_v12, %v459_v41  ;;  %v1676_v44 = vadd.f32 %v1379_v12, %v469_v42  ;;  %v1758_v12 = vld [vmem:[#allocation2 + $0x70] sm:$0xff] }
  0xdb   : > { %526 = vmax.xlane.f32.xlu1 %v1659_v35  ;;  %485 = vst [vmem:[#allocation4 + $0x38] sm:$0xff] %v1674_v43 }
  0xdc   : > { %518 = vmax.xlane.f32.xlu0 %v1648_v31  ;;  %489 = vst [vmem:[#allocation4 + $0x28] sm:$0xff] %v1676_v44  ;;  %528 = vmax.xlane.f32.xlu2 %v1674_v43 }
  0xe3   : > { %512 = vmax.xlane.f32.xlu1 %v1670_v40 }
  0xe4   : > { %536 = vmax.xlane.f32.xlu0 %v1676_v44 }
  0xeb   : > { %520 = vmax.xlane.f32.xlu1 %v1663_v39 }
 0x12f   : > { %v515_v48 = vpop.xlane.xlu2 %514  ;;  %v507_v49 = vpop.xlane.xlu0 %506 }
 0x130   : > { %v1691_v50 = vmax.f32 %v1686_v46, %v515_v48  ;;  %v1694_v51 = vmax.f32 %v1688_v47, %v507_v49 }
 0x132   : > { %831 = vst.msk [vmem:[#allocation2 + $0x20] sm:$0xff] %vm810_vm2, %v1691_v50  ;;  %636 = vperm.xlu1 %1376, %v1694_v51  }
 0x133   : > { %827 = vst.msk [vmem:[#allocation2] sm:$0xff] %vm810_vm2, %v1694_v51 }
 0x137   : > { %v523_v56 = vpop.xlane.xlu2 %522  ;;  %v531_v57 = vpop.xlane.xlu0 %530 }
 0x138   : > { %v1710_v58 = vmax.f32 %v1705_v54, %v523_v56  ;;  %v1713_v59 = vmax.f32 %v1707_v55, %v531_v57 }
 0x13a   : > { %835 = vst.msk [vmem:[#allocation2 + $0x40] sm:$0xff] %vm810_vm2, %v1710_v58  ;;  %656 = vperm.xlu1 %1376, %v1691_v50   ;;  %696 = vperm.xlu0 %1377, %v1713_v59  }
 0x13b   : > { %839 = vst.msk [vmem:[#allocation2 + $0x60] sm:$0xff] %vm810_vm2, %v1713_v59 }
 0x13e   : > { %v533_v1 = vpop.xlane.xlu1 %532 }
 0x13f   : > { %v1732_v2 = vmax.f32 %v1725_v62, %v533_v1  ;;  %v517_v3 = vpop.xlane.xlu2 %516  ;;  %v509_v4 = vpop.xlane.xlu0 %508  ;;  %v1813_v1 = vld [vmem:[#allocation2 + $0x18] sm:$0xff] }
 0x140   : > { %v1735_v5 = vmax.f32 %v1727_v63, %v517_v3  ;;  %v1738_v6 = vmax.f32 %v1729_v0, %v509_v4  ;;  %v1815_v3 = vld [vmem:[#allocation2 + $0x78] sm:$0xff] }
 0x141   : > { %840 = vst.msk [vmem:[#allocation2 + $0x68] sm:$0xff] %vm810_vm2, %v1732_v2 }
 0x142   : > { %832 = vst.msk [vmem:[#allocation2 + $0x28] sm:$0xff] %vm810_vm2, %v1735_v5  ;;  %676 = vperm.xlu1 %1376, %v1710_v58   ;;  %641 = vperm.xlu2 %1378, %v1738_v6  }
 0x143   : > { %828 = vst.msk [vmem:[#allocation2 + $0x8] sm:$0xff] %vm810_vm2, %v1738_v6 }
 0x146   : > { %v511_v13 = vpop.xlane.xlu1 %510 }
 0x147   : > { %v1761_v14 = vmax.f32 %v1754_v10, %v511_v13  ;;  %v525_v17 = vpop.xlane.xlu0 %524  ;;  %v535_v18 = vpop.xlane.xlu2 %534 }
 0x148   : > { %v1764_v20 = vmax.f32 %v1756_v11, %v525_v17  ;;  %v1767_v22 = vmax.f32 %v1758_v12, %v535_v18 }
 0x149   : > { %829 = vst.msk [vmem:[#allocation2 + $0x10] sm:$0xff] %vm810_vm2, %v1761_v14 }
 0x14a   : > { %836 = vst.msk [vmem:[#allocation2 + $0x48] sm:$0xff] %vm810_vm2, %v1764_v20  ;;  %661 = vperm.xlu2 %1378, %v1735_v5   ;;  %681 = vperm.xlu0 %1377, %v1764_v20  }
 0x14b   : > { %841 = vst.msk [vmem:[#allocation2 + $0x70] sm:$0xff] %vm810_vm2, %v1767_v22 }
 0x14e   : > { %v527_v36 = vpop.xlane.xlu1 %526 }
 0x14f   : > { %v1790_v38 = vmax.f32 %v1783_v30, %v527_v36  ;;  %v519_v41 = vpop.xlane.xlu0 %518  ;;  %v529_v42 = vpop.xlane.xlu2 %528 }
 0x150   : > { %v1793_v45 = vmax.f32 %v1785_v33, %v519_v41  ;;  %v1796_v48 = vmax.f32 %v1787_v34, %v529_v42  ;;  %v1834_v42 = vld [vmem:[#allocation2 + $0x38] sm:$0xff] }
 0x151   : > { %837 = vst.msk [vmem:[#allocation2 + $0x50] sm:$0xff] %vm810_vm2, %v1790_v38 }
 0x152   : > { %833 = vst.msk [vmem:[#allocation2 + $0x30] sm:$0xff] %vm810_vm2, %v1793_v45  ;;  %701 = vperm.xlu2 %1378, %v1732_v2   ;;  %646 = vperm.xlu0 %1377, %v1761_v14  }
 0x153   : > { %666 = vperm.xlu1 %1376, %v1793_v45   ;;  %838 = vst.msk [vmem:[#allocation2 + $0x58] sm:$0xff] %vm810_vm2, %v1796_v48 }
 0x156   : > { %v513_v4 = vpop.xlane.xlu1 %512 }
 0x157   : > { %v1818_v13 = vmax.f32 %v1813_v1, %v513_v4  ;;  %v537_v17 = vpop.xlane.xlu0 %536 }
 0x158   : > { %v1821_v18 = vmax.f32 %v1815_v3, %v537_v17 }
 0x159   : > { %830 = vst.msk [vmem:[#allocation2 + $0x18] sm:$0xff] %vm810_vm2, %v1818_v13 }
 0x15a   : > { %842 = vst.msk [vmem:[#allocation2 + $0x78] sm:$0xff] %vm810_vm2, %v1821_v18  ;;  %686 = vperm.xlu2 %1378, %v1790_v38   ;;  %711 = vperm.xlu0 %1377, %v1821_v18  }
 0x15b   : > { %706 = vperm.xlu1 %1376, %v1767_v22  }
 0x15e   : > { %v521_v4 = vpop.xlane.xlu1 %520 }
 0x15f   : > { %v1837_v17 = vmax.f32 %v1834_v42, %v521_v4 }
 0x161   : > { %834 = vst.msk [vmem:[#allocation2 + $0x38] sm:$0xff] %vm810_vm2, %v1837_v17 }
 0x162   : > { %651 = vperm.xlu2 %1378, %v1818_v13  }
 0x163   : > { %691 = vperm.xlu1 %1376, %v1796_v48  }
 0x16a   : > { %671 = vperm.xlu2 %1378, %v1837_v17  }
 0x19c   : > { %v642_v41 = vpop.permute.xlu2 %641 }
 0x19d   : > { %v715_v60 = vsub.f32 %v1634_v23, %v642_v41 }
 0x19f   : > { %v732_v52 = vmul.f32 1.442695, %v715_v60 }
 0x1a4   : > { %v637_v57 = vpop.permute.xlu1 %636  ;;  %v662_v56 = vpop.permute.xlu2 %661 }
 0x1a5   : > { %v714_v7 = vsub.f32 %v1622_v15, %v637_v57 }
 0x1a7   : > { %v730_v25 = vmul.f32 1.442695, %v714_v7 }
 0x1a9   : > { %1380 = vpow2.f32 %v730_v25 }
 0x1ac   : > { %v657_v4 = vpop.permute.xlu1 %656  ;;  %v702_v36 = vpop.permute.xlu2 %701 }
 0x1ad   : > { %v718_v29 = vsub.f32 %v1624_v16, %v657_v4  ;;  %v697_v26 = vpop.permute.xlu0 %696  ;;  %v719_v16 = vsub.f32 %v1636_v24, %v662_v56 }
 0x1ae   : > { %v726_v49 = vsub.f32 %v1630_v19, %v697_v26 }
 0x1af   : > { %v1381_v8 = vpop.eup %1380  ;;  %v738_v9 = vmul.f32 1.442695, %v718_v29  ;;  %v740_v23 = vmul.f32 1.442695, %v719_v16 }
 0x1b0   : > { %v754_v61 = vmul.f32 1.442695, %v726_v49  ;;  %762 = vadd.xlane.f32.xlu2 %v1381_v8 }
 0x1b1   : > { %1382 = vpow2.f32 %v738_v9 }
 0x1b2   : > { %1384 = vpow2.f32 %v754_v61 }
 0x1b3   : > { %1386 = vpow2.f32 %v732_v52 }
 0x1b4   : > { %v677_v53 = vpop.permute.xlu1 %676  ;;  %v687_v15 = vpop.permute.xlu2 %686 }
 0x1b5   : > { %v722_v7 = vsub.f32 %v1632_v21, %v677_v53  ;;  %v724_v26 = vsub.f32 %v1659_v35, %v687_v15 }
 0x1b7   : > { %v1383_v25 = vpop.eup %1382  ;;  %v746_v57 = vmul.f32 1.442695, %v722_v7  ;;  %v750_v61 = vmul.f32 1.442695, %v724_v26 }
 0x1b8   : > { %770 = vadd.xlane.f32.xlu1 %v1383_v25  ;;  %v1385_v19 = vpop.eup %1384 }
 0x1b9   : > { %1388 = vpow2.f32 %v746_v57  ;;  %786 = vadd.xlane.f32.xlu0 %v1385_v19  ;;  %v1387_v29 = vpop.eup %1386 }
 0x1ba   : > { %1390 = vpow2.f32 %v740_v23 }
 0x1bb   : > { %1392 = vpow2.f32 %v750_v61 }
 0x1bc   : > { %v652_v8 = vpop.permute.xlu2 %651  ;;  %v682_v9 = vpop.permute.xlu0 %681 }
 0x1bd   : > { %v723_v60 = vsub.f32 %v1646_v28, %v682_v9  ;;  %v717_v52 = vsub.f32 %v1670_v40, %v652_v8  ;;  %v727_v40 = vsub.f32 %v1644_v27, %v702_v36 }
 0x1bf   : > { %v1389_v49 = vpop.eup %1388  ;;  %v748_v21 = vmul.f32 1.442695, %v723_v60  ;;  %v736_v24 = vmul.f32 1.442695, %v717_v52  ;;  %v756_v19 = vmul.f32 1.442695, %v727_v40  ;;  %v1985_v40 = vsub.f32 %v1729_v0, %v1738_v6 }
 0x1c0   : > { %778 = vadd.xlane.f32.xlu2 %v1389_v49  ;;  %764 = vadd.xlane.f32.xlu1 %v1387_v29  ;;  %v1391_v15 = vpop.eup %1390  ;;  %v1987_v0 = vsub.f32 %v1783_v30, %v1790_v38 }
 0x1c1   : > { %1394 = vpow2.f32 %v748_v21  ;;  %v1393_v28 = vpop.eup %1392 }
 0x1c2   : > { %1396 = vpow2.f32 %v736_v24  ;;  %v606_v6 = vmul.f32 1.442695, %v1987_v0 }
 0x1c4   : > { %v672_v53 = vpop.permute.xlu2 %671  ;;  %v647_v35 = vpop.permute.xlu0 %646 }
 0x1c5   : > { %v721_v56 = vsub.f32 %v1663_v39, %v672_v53  ;;  %v667_v41 = vpop.permute.xlu1 %666  ;;  %v716_v4 = vsub.f32 %v1652_v32, %v647_v35 }
 0x1c6   : > { %v720_v16 = vsub.f32 %v1648_v31, %v667_v41 }
 0x1c7   : > { %v744_v7 = vmul.f32 1.442695, %v721_v56  ;;  %v734_v25 = vmul.f32 1.442695, %v716_v4  ;;  %v1395_v57 = vpop.eup %1394  ;;  %v1982_v56 = vsub.f32 %v1686_v46, %v1691_v50  ;;  %v1983_v4 = vsub.f32 %v1707_v55, %v1713_v59  ;;  %v566_v59 = vld [vmem:[#allocation3 + $0x60] sm:$0xff] }
 0x1c8   : > { %772 = vadd.xlane.f32.xlu2 %v1391_v15  ;;  %782 = vadd.xlane.f32.xlu1 %v1393_v28  ;;  %v1397_v26 = vpop.eup %1396  ;;  %v742_v32 = vmul.f32 1.442695, %v720_v16  ;;  %v554_v28 = vld [vmem:[#allocation3] sm:$0xff]  ;;  %v588_v46 = vmul.f32 1.442695, %v1985_v40 }
 0x1c9   : > { %1398 = vpow2.f32 %v744_v7  ;;  %780 = vadd.xlane.f32.xlu0 %v1395_v57  ;;  %v610_v15 = vmul.f32 1.442695, %v1983_v4  ;;  %v1984_v57 = vsub.f32 %v1705_v54, %v1710_v58  ;;  %v558_v16 = vld [vmem:[#allocation3 + $0x20] sm:$0xff] }
 0x1ca   : > { %1400 = vpow2.f32 %v734_v25 }
 0x1cb   : > { %1402 = vpow2.f32 %v756_v19 }
 0x1cc   : > { %v712_v8 = vpop.permute.xlu0 %711  ;;  %1404 = vpow2.f32 %v742_v32 }
 0x1cd   : > { %v707_v39 = vpop.permute.xlu1 %706  ;;  %v729_v61 = vsub.f32 %v1676_v44, %v712_v8 }
 0x1ce   : > { %v728_v21 = vsub.f32 %v1661_v37, %v707_v39  ;;  %v594_v37 = vmul.f32 1.442695, %v1982_v56  ;;  %v564_v56 = vld [vmem:[#allocation3 + $0x50] sm:$0xff] }
 0x1cf   : > { %v1399_v23 = vpop.eup %1398  ;;  %v760_v31 = vmul.f32 1.442695, %v729_v61 }
 0x1d0   : > { %768 = vadd.xlane.f32.xlu2 %v1397_v26  ;;  %776 = vadd.xlane.f32.xlu1 %v1399_v23  ;;  %v1401_v9 = vpop.eup %1400  ;;  %v758_v52 = vmul.f32 1.442695, %v728_v21  ;;  %v1986_v26 = vsub.f32 %v1727_v63, %v1735_v5  ;;  %v1990_v21 = vsub.f32 %v1834_v42, %v1837_v17 }
 0x1d1   : > { %766 = vadd.xlane.f32.xlu0 %v1401_v9  ;;  %v1403_v60 = vpop.eup %1402  ;;  %v1988_v9 = vsub.f32 %v1756_v11, %v1764_v20 }
 0x1d2   : > { %v1405_v49 = vpop.eup %1404  ;;  %v596_v54 = vmul.f32 1.442695, %v1986_v26 }
 0x1d3   : > { %v604_v61 = vmul.f32 1.442695, %v1988_v9 }
 0x1d5   : > { %v692_v27 = vpop.permute.xlu1 %691 }
 0x1d6   : > { %v725_v36 = vsub.f32 %v1674_v43, %v692_v27  ;;  %v1981_v43 = vsub.f32 %v1688_v47, %v1694_v51  ;;  %v602_v47 = vmul.f32 1.442695, %v1984_v57 }
 0x1d8   : > { %v752_v29 = vmul.f32 1.442695, %v725_v36  ;;  %788 = vadd.xlane.f32.xlu1 %v1403_v60  ;;  %v586_v35 = vmul.f32 1.442695, %v1981_v43  ;;  %v562_v60 = vld [vmem:[#allocation3 + $0x40] sm:$0xff] }
 0x1d9   : > { %774 = vadd.xlane.f32.xlu0 %v1405_v49 }
 0x1da   : > { %1406 = vpow2.f32 %v752_v29  ;;  %v1989_v29 = vsub.f32 %v1813_v1, %v1818_v13  ;;  %v563_v13 = vld [vmem:[#allocation3 + $0x48] sm:$0xff] }
 0x1db   : > { %1408 = vpow2.f32 %v760_v31  ;;  %v555_v31 = vld [vmem:[#allocation3 + $0x8] sm:$0xff] }
 0x1dc   : > { %1410 = vpow2.f32 %v758_v52  ;;  %v592_v11 = vmul.f32 1.442695, %v1989_v29  ;;  %v600_v52 = vmul.f32 1.442695, %v1990_v21 }
 0x1dd   : > { %1412 = vpow2.f32 %v586_v35  ;;  %v559_v35 = vld [vmem:[#allocation3 + $0x28] sm:$0xff] }
 0x1de   : > { %1414 = vpow2.f32 %v594_v37 }
 0x1df   : > { %1416 = vpow2.f32 %v610_v15 }
 0x1e0   : > { %v1407_v24 = vpop.eup %1406  ;;  %1418 = vpow2.f32 %v602_v47 }
 0x1e1   : > { %v1409_v53 = vpop.eup %1408  ;;  %784 = vadd.xlane.f32.xlu2 %v1407_v24  ;;  %1420 = vpow2.f32 %v588_v46  ;;  %v557_v46 = vld [vmem:[#allocation3 + $0x18] sm:$0xff] }
 0x1e2   : > { %792 = vadd.xlane.f32.xlu0 %v1409_v53  ;;  %v1411_v44 = vpop.eup %1410  ;;  %1422 = vpow2.f32 %v596_v54 }
 0x1e3   : > { %v1413_v41 = vpop.eup %1412  ;;  %1424 = vpow2.f32 %v606_v6  ;;  %v1995_v6 = vsub.f32 %v1815_v3, %v1821_v18 }
 0x1e4   : > { %v618_v7 = vmul.f32 %v1413_v41, %v554_v28  ;;  %v1415_v50 = vpop.eup %1414  ;;  %1426 = vpow2.f32 %v604_v61  ;;  %v560_v61 = vld [vmem:[#allocation3 + $0x30] sm:$0xff] }
 0x1e5   : > { %v1417_v55 = vpop.eup %1416  ;;  %v622_v19 = vmul.f32 %v1415_v50, %v558_v16  ;;  %1428 = vpow2.f32 %v592_v11  ;;  %v561_v50 = vld [vmem:[#allocation3 + $0x38] sm:$0xff] }
 0x1e6   : > { %v630_v23 = vmul.f32 %v1417_v55, %v566_v59  ;;  %v1419_v8 = vpop.eup %1418  ;;  %1430 = vpow2.f32 %v600_v52  ;;  %v556_v55 = vld [vmem:[#allocation3 + $0x10] sm:$0xff] }
 0x1e7   : > { %v1421_v36 = vpop.eup %1420  ;;  %v626_v63 = vmul.f32 %v1419_v8, %v562_v60  ;;  %v567_v8 = vld [vmem:[#allocation3 + $0x68] sm:$0xff] }
 0x1e8   : > { %v619_v5 = vmul.f32 %v1421_v36, %v555_v31  ;;  %v1423_v24 = vpop.eup %1422  ;;  %v1996_v31 = vsub.f32 %v1758_v12, %v1767_v22  ;;  %v568_v22 = vld [vmem:[#allocation3 + $0x70] sm:$0xff] }
 0x1e9   : > { %790 = vadd.xlane.f32.xlu2 %v1411_v44  ;;  %v1425_v53 = vpop.eup %1424  ;;  %v1991_v44 = vsub.f32 %v1754_v10, %v1761_v14  ;;  %v623_v37 = vmul.f32 %v1423_v24, %v559_v35  ;;  %v1992_v10 = vsub.f32 %v1725_v62, %v1732_v2 }
 0x1ea   : > { %v1427_v1 = vpop.eup %1426  ;;  %v628_v41 = vmul.f32 %v1425_v53, %v564_v56 }
 0x1eb   : > { %v590_v43 = vmul.f32 1.442695, %v1991_v44  ;;  %v627_v4 = vmul.f32 %v1427_v1, %v563_v13  ;;  %v612_v14 = vmul.f32 1.442695, %v1992_v10  ;;  %v1429_v57 = vpop.eup %1428 }
 0x1ec   : > { %v1431_v47 = vpop.eup %1430  ;;  %v621_v62 = vmul.f32 %v1429_v57, %v557_v46 }
 0x1ed   : > { %1432 = vpow2.f32 %v590_v43  ;;  %v625_v2 = vmul.f32 %v1431_v47, %v561_v50 }
 0x1ee   : > { %1434 = vpow2.f32 %v612_v14 }
 0x1f3   : > { %v1433_v16 = vpop.eup %1432 }
 0x1f4   : > { %v620_v54 = vmul.f32 %v1433_v16, %v556_v55  ;;  %v1435_v0 = vpop.eup %1434 }
 0x223   : > { %v763_v25 = vpop.xlane.xlu2 %762 }
 0x224   : > { %v794_v51 = vadd.f32 %v763_v25, %v618_v7 }
 0x226   : > { %811 = vst.msk [vmem:[#allocation3] sm:$0xff] %vm810_vm2, %v794_v51  ;;  %v1993_v51 = vsub.f32 %v1785_v33, %v1793_v45  ;;  %v1994_v33 = vsub.f32 %v1787_v34, %v1796_v48 }
 0x228   : > { %v598_v40 = vmul.f32 1.442695, %v1993_v51  ;;  %v608_v45 = vmul.f32 1.442695, %v1994_v33 }
 0x22a   : > { %1436 = vpow2.f32 %v598_v40 }
 0x22b   : > { %v771_v39 = vpop.xlane.xlu1 %770  ;;  %1438 = vpow2.f32 %v608_v45 }
 0x22c   : > { %v798_v58 = vadd.f32 %v771_v39, %v622_v19  ;;  %v787_v32 = vpop.xlane.xlu0 %786 }
 0x22d   : > { %v806_v27 = vadd.f32 %v787_v32, %v630_v23  ;;  %v616_v32 = vmul.f32 1.442695, %v1995_v6 }
 0x22e   : > { %815 = vst.msk [vmem:[#allocation3 + $0x20] sm:$0xff] %vm810_vm2, %v798_v58 }
 0x22f   : > { %823 = vst.msk [vmem:[#allocation3 + $0x60] sm:$0xff] %vm810_vm2, %v806_v27  ;;  %v631_v27 = vmul.f32 %v1435_v0, %v567_v8  ;;  %1440 = vpow2.f32 %v616_v32 }
 0x230   : > { %v1437_v9 = vpop.eup %1436 }
 0x231   : > { %v624_v36 = vmul.f32 %v1437_v9, %v560_v61  ;;  %v1439_v18 = vpop.eup %1438 }
 0x233   : > { %v779_v30 = vpop.xlane.xlu2 %778  ;;  %v765_v38 = vpop.xlane.xlu1 %764 }
 0x234   : > { %v802_v20 = vadd.f32 %v779_v30, %v626_v63  ;;  %v795_v49 = vadd.f32 %v765_v38, %v619_v5  ;;  %v614_v63 = vmul.f32 1.442695, %v1996_v31  ;;  %v565_v5 = vld [vmem:[#allocation3 + $0x58] sm:$0xff] }
 0x235   : > { %v1441_v30 = vpop.eup %1440  ;;  %v569_v38 = vld [vmem:[#allocation3 + $0x78] sm:$0xff]  ;;  %v629_v29 = vmul.f32 %v1439_v18, %v565_v5 }
 0x236   : > { %819 = vst.msk [vmem:[#allocation3 + $0x40] sm:$0xff] %vm810_vm2, %v802_v20  ;;  %1442 = vpow2.f32 %v614_v63  ;;  %v633_v20 = vmul.f32 %v1441_v30, %v569_v38 }
 0x237   : > { %812 = vst.msk [vmem:[#allocation3 + $0x8] sm:$0xff] %vm810_vm2, %v795_v49 }
 0x23b   : > { %v773_v42 = vpop.xlane.xlu2 %772  ;;  %v783_v17 = vpop.xlane.xlu1 %782 }
 0x23c   : > { %v799_v15 = vadd.f32 %v773_v42, %v623_v37  ;;  %v804_v28 = vadd.f32 %v783_v17, %v628_v41  ;;  %v781_v7 = vpop.xlane.xlu0 %780  ;;  %v1443_v12 = vpop.eup %1442 }
 0x23d   : > { %v803_v25 = vadd.f32 %v781_v7, %v627_v4  ;;  %v632_v24 = vmul.f32 %v1443_v12, %v568_v22 }
 0x23e   : > { %816 = vst.msk [vmem:[#allocation3 + $0x28] sm:$0xff] %vm810_vm2, %v799_v15 }
 0x23f   : > { %821 = vst.msk [vmem:[#allocation3 + $0x50] sm:$0xff] %vm810_vm2, %v804_v28 }
 0x240   : > { %820 = vst.msk [vmem:[#allocation3 + $0x48] sm:$0xff] %vm810_vm2, %v803_v25 }
 0x243   : > { %v769_v59 = vpop.xlane.xlu2 %768  ;;  %v777_v19 = vpop.xlane.xlu1 %776 }
 0x244   : > { %v797_v39 = vadd.f32 %v769_v59, %v621_v62  ;;  %v801_v26 = vadd.f32 %v777_v19, %v625_v2  ;;  %v767_v58 = vpop.xlane.xlu0 %766 }
 0x245   : > { %v796_v23 = vadd.f32 %v767_v58, %v620_v54 }
 0x246   : > { %814 = vst.msk [vmem:[#allocation3 + $0x18] sm:$0xff] %vm810_vm2, %v797_v39 }
 0x247   : > { %818 = vst.msk [vmem:[#allocation3 + $0x38] sm:$0xff] %vm810_vm2, %v801_v26 }
 0x248   : > { %813 = vst.msk [vmem:[#allocation3 + $0x10] sm:$0xff] %vm810_vm2, %v796_v23 }
 0x24b   : > { %v789_v34 = vpop.xlane.xlu1 %788 }
 0x24c   : > { %v807_v48 = vadd.f32 %v789_v34, %v631_v27  ;;  %v775_v60 = vpop.xlane.xlu0 %774 }
 0x24d   : > { %v800_v3 = vadd.f32 %v775_v60, %v624_v36 }
 0x24e   : > { %824 = vst.msk [vmem:[#allocation3 + $0x68] sm:$0xff] %vm810_vm2, %v807_v48 }
 0x24f   : > { %817 = vst.msk [vmem:[#allocation3 + $0x30] sm:$0xff] %vm810_vm2, %v800_v3 }
 0x254   : > { %v785_v11 = vpop.xlane.xlu2 %784 }
 0x255   : > { %v805_v49 = vadd.f32 %v785_v11, %v629_v29  ;;  %v793_v21 = vpop.xlane.xlu0 %792 }
 0x256   : > { %v809_v52 = vadd.f32 %v793_v21, %v633_v20 }
 0x257   : > { %822 = vst.msk [vmem:[#allocation3 + $0x58] sm:$0xff] %vm810_vm2, %v805_v49 }
 0x258   : > { %826 = vst.msk [vmem:[#allocation3 + $0x78] sm:$0xff] %vm810_vm2, %v809_v52 }
 0x25c   : > { %v791_v53 = vpop.xlane.xlu2 %790 }
 0x25d   : > { %v808_v44 = vadd.f32 %v791_v53, %v632_v24 }
 0x25f   : > { %825 = vst.msk [vmem:[#allocation3 + $0x70] sm:$0xff] %vm810_vm2, %v808_v44 }
 0x260 PF: > { %p843_p6 = scmp.eq.s32.totalorder %s1493_s12, 1 }
 0x261   : > { %v864_v43 = vld [vmem:[#allocation3] sm:$0xff] (%p843_p6)  ;;  %v865_v35 = vld [vmem:[#allocation3 + $0x8] sm:$0xff] (%p843_p6)  ;;  %v866_v56 = vld [vmem:[#allocation3 + $0x10] sm:$0xff] (%p843_p6)  ;;  %vm928_vm3 = vcmask (%p843_p6), 7168  }
 0x262   : > { %847 = sbr.rel (!%p843_p6) target bundleno = 637 (0x27d), region = 44  ;;  %1444 = vlog2.f32 (%p843_p6), %v864_v43  ;;  %v867_v1 = vld [vmem:[#allocation3 + $0x18] sm:$0xff] (%p843_p6)  ;;  %v868_v13 = vld [vmem:[#allocation3 + $0x20] sm:$0xff] (%p843_p6)  ;;  %v869_v37 = vld [vmem:[#allocation3 + $0x28] sm:$0xff] (%p843_p6) }
 0x263   : > { %1446 = vlog2.f32 (%p843_p6), %v865_v35  ;;  %v870_v41 = vld [vmem:[#allocation3 + $0x30] sm:$0xff] (%p843_p6)  ;;  %v871_v42 = vld [vmem:[#allocation3 + $0x38] sm:$0xff] (%p843_p6)  ;;  %v872_v17 = vld [vmem:[#allocation3 + $0x40] sm:$0xff] (%p843_p6) }
 0x264   : > { %1448 = vlog2.f32 (%p843_p6), %v866_v56  ;;  %v848_v15 = vld [vmem:[#allocation2] sm:$0xff] (%p843_p6)  ;;  %v873_v28 = vld [vmem:[#allocation3 + $0x48] sm:$0xff] (%p843_p6)  ;;  %v874_v25 = vld [vmem:[#allocation3 + $0x50] sm:$0xff] (%p843_p6) }
 0x265   : > { %1450 = vlog2.f32 (%p843_p6), %v867_v1  ;;  %v849_v14 = vld [vmem:[#allocation2 + $0x8] sm:$0xff] (%p843_p6)  ;;  %v850_v51 = vld [vmem:[#allocation2 + $0x10] sm:$0xff] (%p843_p6)  ;;  %v875_v40 = vld [vmem:[#allocation3 + $0x58] sm:$0xff] (%p843_p6) }
 0x266   : > { %1452 = vlog2.f32 (%p843_p6), %v868_v13  ;;  %v851_v55 = vld [vmem:[#allocation2 + $0x18] sm:$0xff] (%p843_p6)  ;;  %v876_v62 = vld [vmem:[#allocation3 + $0x60] sm:$0xff] (%p843_p6)  ;;  %v877_v26 = vld [vmem:[#allocation3 + $0x68] sm:$0xff] (%p843_p6) }
 0x267   : > { %1454 = vlog2.f32 %v869_v37  ;;  %v852_v39 = vld [vmem:[#allocation2 + $0x20] sm:$0xff]  ;;  %v853_v45 = vld [vmem:[#allocation2 + $0x28] sm:$0xff]  ;;  %v878_v23 = vld [vmem:[#allocation3 + $0x70] sm:$0xff] }
 0x268   : > { %v1445_v4 = vpop.eup %1444  ;;  %1456 = vlog2.f32 %v870_v41  ;;  %v854_v8 = vld [vmem:[#allocation2 + $0x30] sm:$0xff]  ;;  %v879_v9 = vld [vmem:[#allocation3 + $0x78] sm:$0xff]  ;;  %v856_v63 = vld [vmem:[#allocation2 + $0x40] sm:$0xff] }
 0x269   : > { %v1447_v7 = vpop.eup %1446  ;;  %v881_v10 = vmul.f32 0.6931472, %v1445_v4  ;;  %1458 = vlog2.f32 %v871_v42  ;;  %v855_v48 = vld [vmem:[#allocation2 + $0x38] sm:$0xff]  ;;  %v857_v30 = vld [vmem:[#allocation2 + $0x48] sm:$0xff]  ;;  %v858_v20 = vld [vmem:[#allocation2 + $0x50] sm:$0xff] }
 0x26a   : > { %v1449_v57 = vpop.eup %1448  ;;  %v883_v47 = vmul.f32 0.6931472, %v1447_v7  ;;  %1460 = vlog2.f32 %v872_v17  ;;  %v859_v12 = vld [vmem:[#allocation2 + $0x58] sm:$0xff]  ;;  %v860_v44 = vld [vmem:[#allocation2 + $0x60] sm:$0xff]  ;;  %v861_v1 = vld [vmem:[#allocation2 + $0x68] sm:$0xff] }
 0x26b   : > { %v1451_v46 = vpop.eup %1450  ;;  %v912_v50 = vadd.f32 %v881_v10, %v848_v15  ;;  %v885_v16 = vmul.f32 0.6931472, %v1449_v57  ;;  %1462 = vlog2.f32 %v873_v28  ;;  %v862_v42 = vld [vmem:[#allocation2 + $0x70] sm:$0xff]  ;;  %v863_v28 = vld [vmem:[#allocation2 + $0x78] sm:$0xff] }
 0x26c   : > { %v1453_v2 = vpop.eup %1452  ;;  %v913_v59 = vadd.f32 %v883_v47, %v849_v14  ;;  %v887_v19 = vmul.f32 0.6931472, %v1451_v46  ;;  %1464 = vlog2.f32 %v874_v25 }
 0x26d   : > { %v1455_v54 = vpop.eup %1454  ;;  %929 = vst.msk [vmem:[#allocation2] sm:$0xff] %vm928_vm3, %v912_v50  ;;  %v914_v58 = vadd.f32 %v885_v16, %v850_v51  ;;  %v889_v33 = vmul.f32 0.6931472, %v1453_v2  ;;  %1466 = vlog2.f32 %v875_v40 }
 0x26e   : > { %v1457_v0 = vpop.eup %1456  ;;  %930 = vst.msk [vmem:[#allocation2 + $0x8] sm:$0xff] %vm928_vm3, %v913_v59  ;;  %v915_v6 = vadd.f32 %v887_v19, %v851_v55  ;;  %v891_v32 = vmul.f32 0.6931472, %v1455_v54  ;;  %1468 = vlog2.f32 %v876_v62 }
 0x26f   : > { %v1459_v61 = vpop.eup %1458  ;;  %931 = vst.msk [vmem:[#allocation2 + $0x10] sm:$0xff] %vm928_vm3, %v914_v58  ;;  %v916_v27 = vadd.f32 %v889_v33, %v852_v39  ;;  %v893_v34 = vmul.f32 0.6931472, %v1457_v0  ;;  %1470 = vlog2.f32 %v877_v26 }
 0x270   : > { %v1461_v36 = vpop.eup %1460  ;;  %932 = vst.msk [vmem:[#allocation2 + $0x18] sm:$0xff] %vm928_vm3, %v915_v6  ;;  %v917_v60 = vadd.f32 %v891_v32, %v853_v45  ;;  %v895_v31 = vmul.f32 0.6931472, %v1459_v61  ;;  %1472 = vlog2.f32 %v878_v23 }
 0x271   : > { %v1463_v3 = vpop.eup %1462  ;;  %933 = vst.msk [vmem:[#allocation2 + $0x20] sm:$0xff] %vm928_vm3, %v916_v27  ;;  %v918_v18 = vadd.f32 %v893_v34, %v854_v8  ;;  %v897_v5 = vmul.f32 0.6931472, %v1461_v36  ;;  %1474 = vlog2.f32 %v879_v9 }
 0x272   : > { %v1465_v38 = vpop.eup %1464  ;;  %934 = vst.msk [vmem:[#allocation2 + $0x28] sm:$0xff] %vm928_vm3, %v917_v60  ;;  %v919_v29 = vadd.f32 %v895_v31, %v855_v48  ;;  %v899_v11 = vmul.f32 0.6931472, %v1463_v3 }
 0x273   : > { %v1467_v49 = vpop.eup %1466  ;;  %935 = vst.msk [vmem:[#allocation2 + $0x30] sm:$0xff] %vm928_vm3, %v918_v18  ;;  %v920_v21 = vadd.f32 %v897_v5, %v856_v63  ;;  %v901_v52 = vmul.f32 0.6931472, %v1465_v38 }
 0x274   : > { %v1469_v22 = vpop.eup %1468  ;;  %936 = vst.msk [vmem:[#allocation2 + $0x38] sm:$0xff] %vm928_vm3, %v919_v29  ;;  %v921_v24 = vadd.f32 %v899_v11, %v857_v30  ;;  %v903_v53 = vmul.f32 0.6931472, %v1467_v49 }
 0x275   : > { %v1471_v43 = vpop.eup %1470  ;;  %937 = vst.msk [vmem:[#allocation2 + $0x40] sm:$0xff] %vm928_vm3, %v920_v21  ;;  %v922_v35 = vadd.f32 %v901_v52, %v858_v20  ;;  %v905_v56 = vmul.f32 0.6931472, %v1469_v22 }
 0x276   : > { %v1473_v13 = vpop.eup %1472  ;;  %938 = vst.msk [vmem:[#allocation2 + $0x48] sm:$0xff] %vm928_vm3, %v921_v24  ;;  %v923_v37 = vadd.f32 %v903_v53, %v859_v12  ;;  %v907_v41 = vmul.f32 0.6931472, %v1471_v43 }
 0x277   : > { %v1475_v17 = vpop.eup %1474  ;;  %939 = vst.msk [vmem:[#allocation2 + $0x50] sm:$0xff] %vm928_vm3, %v922_v35  ;;  %v924_v4 = vadd.f32 %v905_v56, %v860_v44  ;;  %v909_v15 = vmul.f32 0.6931472, %v1473_v13 }
 0x278   : > { %940 = vst.msk [vmem:[#allocation2 + $0x58] sm:$0xff] %vm928_vm3, %v923_v37  ;;  %v925_v7 = vadd.f32 %v907_v41, %v861_v1  ;;  %v911_v10 = vmul.f32 0.6931472, %v1475_v17 }
 0x279   : > { %941 = vst.msk [vmem:[#allocation2 + $0x60] sm:$0xff] %vm928_vm3, %v924_v4  ;;  %v926_v14 = vadd.f32 %v909_v15, %v862_v42 }
 0x27a   : > { %942 = vst.msk [vmem:[#allocation2 + $0x68] sm:$0xff] %vm928_vm3, %v925_v7  ;;  %v927_v25 = vadd.f32 %v911_v10, %v863_v28 }
 0x27b   : > { %943 = vst.msk [vmem:[#allocation2 + $0x70] sm:$0xff] %vm928_vm3, %v926_v14 }
 0x27c   : > { %944 = vst.msk [vmem:[#allocation2 + $0x78] sm:$0xff] %vm928_vm3, %v927_v25 }
 0x27d PF: > { %p1278_p7 = scmp.ne.s32.totalorder %s1493_s12, 1 }
 0x27f   : > { %947 = sbr.rel (%p1278_p7) target bundleno = 807 (0x327), region = 48 }
 0x284   : > { %v970_v57 = vld [vmem:[#allocation2 + $0x20] sm:$0xff]  ;;  %v968_v47 = vld [vmem:[#allocation2 + $0x10] sm:$0xff]  ;;  %v1506_v40 = vmov 0   ;;  %v971_v46 = vld [vmem:[#allocation2 + $0x28] sm:$0xff] }
 0x285   : > { %v966_v51 = vld [vmem:[#allocation2] sm:$0xff]  ;;  %1478 = vset.pattern.permute.xlu2 %v1506_v40  ;;  %1477 = vset.pattern.permute.xlu1 %v1506_v40  ;;  %v969_v50 = vld [vmem:[#allocation2 + $0x18] sm:$0xff]  ;;  %v967_v16 = vld [vmem:[#allocation2 + $0x8] sm:$0xff] }
 0x286   : > { %1476 = vset.pattern.permute.xlu0 %v1506_v40  ;;  %1004 = vperm.xlu2 %1478, %v970_v57   ;;  %v974_v55 = vld [vmem:[#allocation2 + $0x40] sm:$0xff]  ;;  %v973_v62 = vld [vmem:[#allocation2 + $0x38] sm:$0xff]  ;;  %v972_v2 = vld [vmem:[#allocation2 + $0x30] sm:$0xff] }
 0x287   : > { %994 = vperm.xlu1 %1477, %v968_v47   ;;  %984 = vperm.xlu0 %1476, %v966_v51   ;;  %v977_v59 = vld [vmem:[#allocation2 + $0x58] sm:$0xff]  ;;  %v976_v19 = vld [vmem:[#allocation2 + $0x50] sm:$0xff]  ;;  %v975_v39 = vld [vmem:[#allocation2 + $0x48] sm:$0xff] }
 0x288   : > { %v980_v26 = vld [vmem:[#allocation2 + $0x70] sm:$0xff]  ;;  %v979_v54 = vld [vmem:[#allocation2 + $0x68] sm:$0xff]  ;;  %v978_v58 = vld [vmem:[#allocation2 + $0x60] sm:$0xff] }
 0x289   : > { %v981_v33 = vld [vmem:[#allocation2 + $0x78] sm:$0xff]  ;;  %v954_v23 = vld [vmem:[#allocation4 + $0x50] sm:$0xff]  ;;  %v955_v0 = vld [vmem:[#allocation4 + $0x68] sm:$0xff] }
 0x28a   : > { %v952_v34 = vld [vmem:[#allocation4 + $0x58] sm:$0xff]  ;;  %v950_v48 = vld [vmem:[#allocation4 + $0x30] sm:$0xff]  ;;  %v951_v60 = vld [vmem:[#allocation4] sm:$0xff] }
 0x28b   : > { %v953_v36 = vld [vmem:[#allocation4 + $0x18] sm:$0xff]  ;;  %v957_v20 = vld [vmem:[#allocation4 + $0x48] sm:$0xff]  ;;  %v958_v53 = vld [vmem:[#allocation4 + $0x40] sm:$0xff] }
 0x28c   : > { %v956_v49 = vld [vmem:[#allocation4 + $0x8] sm:$0xff]  ;;  %v961_v44 = vld [vmem:[#allocation4 + $0x38] sm:$0xff]  ;;  %v960_v43 = vld [vmem:[#allocation4 + $0x10] sm:$0xff] }
 0x28d   : > { %v959_v35 = vld [vmem:[#allocation4 + $0x20] sm:$0xff]  ;;  %v963_v28 = vld [vmem:[#allocation4 + $0x70] sm:$0xff]  ;;  %v964_v40 = vld [vmem:[#allocation4 + $0x78] sm:$0xff] }
 0x28e   : > { %1009 = vperm.xlu2 %1478, %v971_v46   ;;  %v962_v7 = vld [vmem:[#allocation4 + $0x60] sm:$0xff]  ;;  %v965_v46 = vld [vmem:[#allocation4 + $0x28] sm:$0xff] }
 0x28f   : > { %999 = vperm.xlu1 %1477, %v969_v50   ;;  %989 = vperm.xlu0 %1476, %v967_v16  }
 0x296   : > { %1024 = vperm.xlu2 %1478, %v974_v55  }
 0x297   : > { %1019 = vperm.xlu1 %1477, %v973_v62   ;;  %1014 = vperm.xlu0 %1476, %v972_v2  }
 0x29e   : > { %1039 = vperm.xlu2 %1478, %v977_v59  }
 0x29f   : > { %1034 = vperm.xlu1 %1477, %v976_v19   ;;  %1029 = vperm.xlu0 %1476, %v975_v39  }
 0x2a6   : > { %1054 = vperm.xlu2 %1478, %v980_v26  }
 0x2a7   : > { %1049 = vperm.xlu1 %1477, %v979_v54   ;;  %1044 = vperm.xlu0 %1476, %v978_v58  }
 0x2af   : > { %1059 = vperm.xlu0 %1476, %v981_v33  }
 0x2e0   : > { %v1005_v45 = vpop.permute.xlu2 %1004 }
 0x2e1   : > { %v1066_v6 = vsub.f32 %v954_v23, %v1005_v45 }
 0x2e8   : > { %v1010_v32 = vpop.permute.xlu2 %1009 }
 0x2e9   : > { %v1067_v8 = vsub.f32 %v955_v0, %v1010_v32 }
 0x2eb   : > { %v1308_v9 = vpack.c.bf16 %v1067_v8, %v1066_v6 }
 0x2ed   : > { %1336 = vst [vmem:[%s1980_s3 + $0x10] sm:$0xff] %v1308_v9  }
 0x2f0   : > { %v1025_v11 = vpop.permute.xlu2 %1024 }
 0x2f1   : > { %v1070_v37 = vsub.f32 %v958_v53, %v1025_v11 }
 0x2f8   : > { %v1040_v56 = vpop.permute.xlu2 %1039 }
 0x2f9   : > { %v995_v61 = vpop.permute.xlu1 %994  ;;  %v985_v27 = vpop.permute.xlu0 %984  ;;  %v1073_v41 = vsub.f32 %v961_v44, %v1040_v56 }
 0x2fa   : > { %v1064_v31 = vsub.f32 %v952_v34, %v995_v61  ;;  %v1062_v18 = vsub.f32 %v950_v48, %v985_v27 }
 0x300   : > { %v1055_v51 = vpop.permute.xlu2 %1054 }
 0x301   : > { %v1000_v63 = vpop.permute.xlu1 %999  ;;  %v990_v3 = vpop.permute.xlu0 %989  ;;  %v1076_v16 = vsub.f32 %v964_v40, %v1055_v51 }
 0x302   : > { %v1065_v5 = vsub.f32 %v953_v36, %v1000_v63  ;;  %v1063_v30 = vsub.f32 %v951_v60, %v990_v3 }
 0x304   : > { %v1303_v38 = vpack.c.bf16 %v1065_v5, %v1064_v31  ;;  %v1298_v29 = vpack.c.bf16 %v1063_v30, %v1062_v18 }
 0x306   : > { %1335 = vst [vmem:[%s1980_s3 + $0x8] sm:$0xff] %v1303_v38  }
 0x307   : > { %1299 = vst [vmem:[%s1980_s3] sm:$0xff] %v1298_v29  }
 0x309   : > { %v1020_v21 = vpop.permute.xlu1 %1019  ;;  %v1015_v52 = vpop.permute.xlu0 %1014 }
 0x30a   : > { %v1069_v12 = vsub.f32 %v957_v20, %v1020_v21  ;;  %v1068_v22 = vsub.f32 %v956_v49, %v1015_v52 }
 0x30c   : > { %v1313_v24 = vpack.c.bf16 %v1069_v12, %v1068_v22 }
 0x30e   : > { %1337 = vst [vmem:[%s1980_s3 + $0x18] sm:$0xff] %v1313_v24  }
 0x311   : > { %v1035_v1 = vpop.permute.xlu1 %1034  ;;  %v1030_v13 = vpop.permute.xlu0 %1029 }
 0x312   : > { %v1072_v42 = vsub.f32 %v960_v43, %v1035_v1  ;;  %v1071_v17 = vsub.f32 %v959_v35, %v1030_v13 }
 0x314   : > { %v1323_v4 = vpack.c.bf16 %v1073_v41, %v1072_v42  ;;  %v1318_v15 = vpack.c.bf16 %v1071_v17, %v1070_v37 }
 0x316   : > { %1339 = vst [vmem:[%s1980_s3 + $0x28] sm:$0xff] %v1323_v4  }
 0x317   : > { %1338 = vst [vmem:[%s1980_s3 + $0x20] sm:$0xff] %v1318_v15  }
 0x319   : > { %v1050_v10 = vpop.permute.xlu1 %1049  ;;  %v1045_v14 = vpop.permute.xlu0 %1044 }
 0x31a   : > { %v1075_v25 = vsub.f32 %v963_v28, %v1050_v10  ;;  %v1074_v57 = vsub.f32 %v962_v7, %v1045_v14 }
 0x31c   : > { %v1328_v47 = vpack.c.bf16 %v1075_v25, %v1074_v57 }
 0x31e   : > { %1340 = vst [vmem:[%s1980_s3 + $0x30] sm:$0xff] %v1328_v47  }
 0x321   : > { %v1060_v50 = vpop.permute.xlu0 %1059 }
 0x322   : > { %v1077_v55 = vsub.f32 %v965_v46, %v1060_v50 }
 0x324   : > { %v1333_v62 = vpack.c.bf16 %v1077_v55, %v1076_v16 }
 0x326   : > { %1341 = vst [vmem:[%s1980_s3 + $0x38] sm:$0xff] %v1333_v62  }
 0x327 PF: > { %s13_s14 = sadd.s32 1, %s1501_s14   ;;  %s1997_s12 = smov %s1497_s13 }
 0x328   : > { %p10_p8 = scmp.ge.s32.totalorder %s13_s14, 4   ;;  %s1998_s13 = smov %s2000_s15 }
 0x32a   :  { %12 = sbr.rel (!%p10_p8) target bundleno = 2 (0x2), region = 86 }

</bundles_post_ra>
